<compile_context>
chip_gen: v5e
topology: v5e:2x2
jax: 0.10.0
libtpu: 0.0.40
codegen_flags: <defaults>
</compile_context>

<pallas_src>
import functools

import jax
import jax.numpy as jnp
from jax.experimental import pallas as pl
from jax.experimental.pallas import tpu as pltpu

C_IN = 64      # mel bins / conv1 in-channels
C_MID = 64     # conv1 out-channels
C_OUT = 128    # conv2 out-channels / feature dim
K = 3          # conv kernel size
BN_EPS = 1e-5


def _shift_rows_up(x, k):
    """result[r] = x[r + k]; rows wrap, wrapped rows only land in never-used slab rows."""
    if k == 0:
        return x
    return jnp.concatenate([x[k:, :], x[:k, :]], axis=0)


# ----------------------------------------------------------------------------
# Pallas kernel: BB samples per grid step, whole forward on one flat slab.
# ----------------------------------------------------------------------------
def _audio_encoder_kernel(x_ref, w1_ref, b1_ref, w2_ref, b2_ref,
                          fcw_ref, fcb_ref, out_ref, h1_scr,
                          *, bb, t_pad, t_real):
    # x_ref block: (bb * t_pad, C_IN) bf16, channels-last, samples stacked on rows.
    m1 = bb * t_pad          # conv1 slab rows
    th = t_pad // 2          # pooled rows per sample (t_pad is a multiple of 16)
    m2 = bb * th             # pooled slab rows
    l1 = t_real - (K - 1)    # valid conv1 rows per sample
    l2 = l1 // 2             # valid pooled rows per sample (PyTorch floor mode)
    l3 = l2 - (K - 1)        # valid conv2 rows per sample

    x = x_ref[...]                                              # (m1, C_IN) bf16

    # ---- Conv1d(64->64,k=3) + folded BN1 + ReLU: 3 accumulating full-slab matmuls.
    h1 = jnp.dot(x, w1_ref[0], preferred_element_type=jnp.float32)
    for k in range(1, K):
        h1 = h1 + jnp.dot(_shift_rows_up(x, k), w1_ref[k],
                          preferred_element_type=jnp.float32)
    h1 = jnp.maximum(h1 + b1_ref[...], 0.0)                     # (m1, C_MID) f32

    # ---- MaxPool1d(kernel=2, stride=2): pairwise max of adjacent time rows via
    # one pair of stride-2 slab reads (sample bases are even since t_pad is even,
    # so even/odd rows of the whole slab are exactly per-sample even/odd frames).
    h1_scr[...] = h1
    h2 = jnp.maximum(h1_scr[pl.ds(0, m2, stride=2), :],
                     h1_scr[pl.ds(1, m2, stride=2), :])         # (m2, C_MID) f32

    # ---- Conv1d(64->128,k=3) + folded BN2 + ReLU: same 3-matmul structure.
    h2b = h2.astype(jnp.bfloat16)
    h3 = jnp.dot(h2b, w2_ref[0], preferred_element_type=jnp.float32)
    for k in range(1, K):
        h3 = h3 + jnp.dot(_shift_rows_up(h2b, k), w2_ref[k],
                          preferred_element_type=jnp.float32)
    h3 = jnp.maximum(h3 + b2_ref[...], 0.0)                     # (m2, C_OUT) f32

    # ---- AdaptiveAvgPool1d(1): masked per-sample mean over the l3 valid rows.
    # th is a multiple of 8, so this reshape never crosses an (8,128) tile.
    h3r = h3.reshape(bb, th, C_OUT)
    tidx = jax.lax.broadcasted_iota(jnp.int32, (1, th, C_OUT), 1)
    feat = jnp.sum(jnp.where(tidx < l3, h3r, 0.0), axis=1) * (1.0 / l3)  # (bb, C_OUT)

    # ---- Linear(128,128) + ReLU (Dropout(0.2) is identity in eval mode).
    y = jnp.dot(feat.astype(jnp.bfloat16), fcw_ref[...],
                preferred_element_type=jnp.float32) + fcb_ref[...]
    out_ref[0] = jnp.maximum(y, 0.0).astype(out_ref.dtype)


# ----------------------------------------------------------------------------
# Parameter setup (matches nn.Module shapes) + BN folding (glue).
# ----------------------------------------------------------------------------
def init_params(key):
    ks = jax.random.split(key, 10)
    return {
        # PyTorch Conv1d weight layout: (out_ch, in_ch, k)
        "conv1_w": 0.1 * jax.random.normal(ks[0], (C_MID, C_IN, K), jnp.float32),
        "conv1_b": 0.1 * jax.random.normal(ks[1], (C_MID,), jnp.float32),
        "bn1_g": 1.0 + 0.1 * jax.random.normal(ks[2], (C_MID,), jnp.float32),
        "bn1_b": 0.1 * jax.random.normal(ks[3], (C_MID,), jnp.float32),
        "bn1_mean": jnp.zeros((C_MID,), jnp.float32),
        "bn1_var": jnp.ones((C_MID,), jnp.float32),
        "conv2_w": 0.1 * jax.random.normal(ks[4], (C_OUT, C_MID, K), jnp.float32),
        "conv2_b": 0.1 * jax.random.normal(ks[5], (C_OUT,), jnp.float32),
        "bn2_g": 1.0 + 0.1 * jax.random.normal(ks[6], (C_OUT,), jnp.float32),
        "bn2_b": 0.1 * jax.random.normal(ks[7], (C_OUT,), jnp.float32),
        "bn2_mean": jnp.zeros((C_OUT,), jnp.float32),
        "bn2_var": jnp.ones((C_OUT,), jnp.float32),
        # PyTorch Linear weight layout: (out, in)
        "fc_w": 0.1 * jax.random.normal(ks[8], (C_OUT, C_OUT), jnp.float32),
        "fc_b": 0.1 * jax.random.normal(ks[9], (C_OUT,), jnp.float32),
    }


def _fold_bn_into_conv(conv_w, conv_b, gamma, beta, mean, var):
    # (out, in, k) -> per-tap (k, in, out) with per-out-channel eval-mode BN
    # scale folded in; bias folded the same way.
    scale = gamma / jnp.sqrt(var + BN_EPS)
    w = jnp.transpose(conv_w, (2, 1, 0)) * scale[None, None, :]     # (K, Cin, Cout)
    b = (conv_b - mean) * scale + beta
    return w.astype(jnp.bfloat16), b.reshape(1, -1).astype(jnp.float32)


def prepare_kernel_params(p):
    w1f, b1f = _fold_bn_into_conv(p["conv1_w"], p["conv1_b"],
                                  p["bn1_g"], p["bn1_b"], p["bn1_mean"], p["bn1_var"])
    w2f, b2f = _fold_bn_into_conv(p["conv2_w"], p["conv2_b"],
                                  p["bn2_g"], p["bn2_b"], p["bn2_mean"], p["bn2_var"])
    fcw = p["fc_w"].T.astype(jnp.bfloat16)          # (in, out) bf16
    fcb = p["fc_b"].reshape(1, -1).astype(jnp.float32)
    return w1f, b1f, w2f, b2f, fcw, fcb


# ----------------------------------------------------------------------------
# Wrapper: layout glue + pallas_call
# ----------------------------------------------------------------------------
def _pick_bb(batch, t_pad):
    # ~3 KiB of VMEM per (sample, time-row) across all in-kernel temporaries.
    bytes_per_row = 3 * 1024
    vmem_budget = 40 * 1024 * 1024
    bb_vmem = max(1, vmem_budget // (bytes_per_row * t_pad))
    if t_pad <= 512:
        bb_cap = 32
    elif t_pad <= 2048:
        bb_cap = 16
    else:
        bb_cap = 8
    bb = int(min(bb_vmem, bb_cap, batch))
    # >= 2 grid steps when possible so both v7x TensorCores get work.
    if batch > 1:
        bb = min(bb, pl.cdiv(batch, 2))
    return max(1, bb)


def audio_encoder_forward(x, params):
    """x: (B, 1, 64, T) float32 (PyTorch-style input). Returns (B, 128) float32."""
    w1f, b1f, w2f, b2f, fcw, fcb = prepare_kernel_params(params)

    B = x.shape[0]
    T = x.shape[-1]
    L1 = T - (K - 1)
    L2 = L1 // 2
    L3 = L2 - (K - 1)
    if L3 < 1:
        raise ValueError(f"T={T} too short for this architecture (need T >= 8)")

    # Pad T so each sample's row span is sublane-tile aligned for both f32 and
    # bf16 and T_pad/2 is a multiple of 8 (pooled reshape stays tile-aligned).
    # Padded rows only feed slab positions that are never used by valid outputs.
    T_pad = ((T + 15) // 16) * 16
    BB = _pick_bb(B, T_pad)
    n_steps = pl.cdiv(B, BB)
    B_pad = n_steps * BB

    # bf16 BEFORE the channels-last transpose (halves the HBM relayout traffic).
    x = jnp.squeeze(x, axis=1).astype(jnp.bfloat16)          # (B, 64, T) bf16
    x = jnp.transpose(x, (0, 2, 1))                          # (B, T, 64)
    x = jnp.pad(x, ((0, B_pad - B), (0, T_pad - T), (0, 0)))
    x = x.reshape(B_pad * T_pad, C_IN)                       # flat rows: free reshape

    # TODO(synk): for very long clips (T_pad >~ 14k) tile the time axis with a
    # (K-1) halo instead of loading a whole sample per grid step.
    est_vmem = 3 * 1024 * BB * T_pad + (4 << 20)
    vmem_limit = int(min(48 * 1024 * 1024, max(32 * 1024 * 1024, est_vmem)))

    kernel = functools.partial(_audio_encoder_kernel, bb=BB, t_pad=T_pad, t_real=T)

    out = pl.pallas_call(
        kernel,
        out_shape=jax.ShapeDtypeStruct((n_steps, BB, C_OUT), jnp.float32),
        grid_spec=pltpu.PrefetchScalarGridSpec(
            num_scalar_prefetch=0,
            grid=(n_steps,),
            in_specs=[
                pl.BlockSpec((BB * T_pad, C_IN), lambda b: (b, 0)),     # x slab
                pl.BlockSpec((K, C_IN, C_MID), lambda b: (0, 0, 0)),    # w1 per-tap (BN folded)
                pl.BlockSpec((1, C_MID), lambda b: (0, 0)),             # b1 (BN folded)
                pl.BlockSpec((K, C_MID, C_OUT), lambda b: (0, 0, 0)),   # w2 per-tap (BN folded)
                pl.BlockSpec((1, C_OUT), lambda b: (0, 0)),             # b2 (BN folded)
                pl.BlockSpec((C_OUT, C_OUT), lambda b: (0, 0)),         # fc weight (in,out)
                pl.BlockSpec((1, C_OUT), lambda b: (0, 0)),             # fc bias
            ],
            out_specs=pl.BlockSpec((1, BB, C_OUT), lambda b: (b, 0, 0)),
            scratch_shapes=[pltpu.VMEM((BB * T_pad, C_MID), jnp.float32)],  # h1 for maxpool
        ),
        compiler_params=pltpu.CompilerParams(
            dimension_semantics=("parallel",),      # batch steps independent
            vmem_limit_bytes=vmem_limit),
    )(x, w1f, b1f, w2f, b2f, fcw, fcb)

    return out.reshape(B_pad, C_OUT)[:B]


# ----------------------------------------------------------------------------
# Pure-JAX reference with the same eval-mode math and the same bf16 matmul
# operands / f32 accumulation, for a tight correctness check.
# ----------------------------------------------------------------------------
def ref_forward(x, params):
    w1f, b1f, w2f, b2f, fcw, fcb = prepare_kernel_params(params)
    x = jnp.transpose(jnp.squeeze(x, axis=1), (0, 2, 1)).astype(jnp.bfloat16)  # (B,T,C)
    _, T, _ = x.shape
    L1 = T - (K - 1)
    L2 = L1 // 2
    L3 = L2 - (K - 1)

    h1 = sum(jnp.einsum("btc,co->bto", x[:, k:k + L1, :], w1f[k],
                        preferred_element_type=jnp.float32) for k in range(K)) + b1f
    h1 = jnp.maximum(h1, 0.0)

    h2 = jnp.maximum(h1[:, 0:2 * L2:2, :], h1[:, 1:2 * L2:2, :])               # (B,L2,64)

    h2b = h2.astype(jnp.bfloat16)
    h3 = sum(jnp.einsum("btc,co->bto", h2b[:, k:k + L3, :], w2f[k],
                        preferred_element_type=jnp.float32) for k in range(K)) + b2f
    h3 = jnp.maximum(h3, 0.0)

    feat = jnp.mean(h3, axis=1)                                                # (B,128)
    y = jnp.dot(feat.astype(jnp.bfloat16), fcw,
                preferred_element_type=jnp.float32) + fcb
    return jnp.maximum(y, 0.0)


if __name__ == "__main__":
    key = jax.random.PRNGKey(0)
    pkey, xkey = jax.random.split(key)
    params = init_params(pkey)

    # Small shapes that exercise batch padding (B_pad=4, BB=2), time padding
    # (T=18 -> T_pad=32) and the odd-L1 maxpool floor behaviour.
    B, T = 3, 18
    x = jax.random.normal(xkey, (B, 1, C_IN, T), jnp.float32)   # (B, 1, n_mels=64, time)

    out = jax.block_until_ready(audio_encoder_forward(x, params))
    ref = ref_forward(x, params)

    assert out.shape == (B, C_OUT), out.shape
    max_err = float(jnp.max(jnp.abs(out - ref)))
    assert jnp.allclose(out, ref, atol=5e-3, rtol=5e-3), f"max_err={max_err}"
    print("KERNEL_OK")
</pallas_src>

<mosaic_0001>
module attributes {stable_mosaic.version = 11 : i64} {
  func.func @_audio_encoder_kernel(%arg0: i32, %arg1: memref<64x64xbf16, #tpu.memory_space<vmem>>, %arg2: memref<3x64x64xbf16, #tpu.memory_space<vmem>>, %arg3: memref<1x64xf32, #tpu.memory_space<vmem>>, %arg4: memref<3x64x128xbf16, #tpu.memory_space<vmem>>, %arg5: memref<1x128xf32, #tpu.memory_space<vmem>>, %arg6: memref<128x128xbf16, #tpu.memory_space<vmem>>, %arg7: memref<1x128xf32, #tpu.memory_space<vmem>>, %arg8: memref<1x2x128xf32, #tpu.memory_space<vmem>>, %arg9: memref<64x64xf32, #tpu.memory_space<vmem>>) attributes {dimension_semantics = [#tpu.dimension_semantics<parallel>], iteration_bounds = array<i64: 2>, scalar_prefetch = 0 : i64, scratch_operands = 1 : i64, tpu.core_type = #tpu.core_type<tc>, window_params = [{transform_indices = @transform_0, window_bounds = array<i64: 64, 64>}, {pipeline_mode = #tpu.pipeline_mode<synchronous>, transform_indices = @transform_1, window_bounds = array<i64: 3, 64, 64>}, {pipeline_mode = #tpu.pipeline_mode<synchronous>, transform_indices = @transform_2, window_bounds = array<i64: 1, 64>}, {pipeline_mode = #tpu.pipeline_mode<synchronous>, transform_indices = @transform_3, window_bounds = array<i64: 3, 64, 128>}, {pipeline_mode = #tpu.pipeline_mode<synchronous>, transform_indices = @transform_4, window_bounds = array<i64: 1, 128>}, {pipeline_mode = #tpu.pipeline_mode<synchronous>, transform_indices = @transform_5, window_bounds = array<i64: 128, 128>}, {pipeline_mode = #tpu.pipeline_mode<synchronous>, transform_indices = @transform_6, window_bounds = array<i64: 1, 128>}, {transform_indices = @transform_7, window_bounds = array<i64: 1, 2, 128>}]} {
    %c0 = arith.constant 0 : index
    %c0_0 = arith.constant 0 : index
    %0 = vector.load %arg1[%c0, %c0_0] : memref<64x64xbf16, #tpu.memory_space<vmem>>, vector<64x64xbf16>
    %c0_1 = arith.constant 0 : index
    %c0_2 = arith.constant 0 : index
    %c0_3 = arith.constant 0 : index
    %1 = vector.load %arg2[%c0_1, %c0_2, %c0_3] : memref<3x64x64xbf16, #tpu.memory_space<vmem>>, vector<1x64x64xbf16>
    %2 = vector.shape_cast %1 : vector<1x64x64xbf16> to vector<64x64xbf16>
    %cst = arith.constant dense<0.000000e+00> : vector<64x64xf32>
    %3 = tpu.matmul %0, %2, %cst {dimension_numbers = #tpu.dot_dimension_numbers<[1], [0], [0], [1], [0, 0, 1, 1], [], []>} : vector<64x64xbf16>, vector<64x64xbf16>, vector<64x64xf32> -> vector<64x64xf32>
    %4 = vector.extract_strided_slice %0 {offsets = [1, 0], sizes = [63, 64], strides = [1, 1]} : vector<64x64xbf16> to vector<63x64xbf16>
    %5 = vector.extract_strided_slice %0 {offsets = [0, 0], sizes = [1, 64], strides = [1, 1]} : vector<64x64xbf16> to vector<1x64xbf16>
    %6 = tpu.concatenate %4, %5 in 0 : vector<63x64xbf16>, vector<1x64xbf16> -> vector<64x64xbf16>
    %c1 = arith.constant 1 : index
    %c0_4 = arith.constant 0 : index
    %c0_5 = arith.constant 0 : index
    %7 = vector.load %arg2[%c1, %c0_4, %c0_5] : memref<3x64x64xbf16, #tpu.memory_space<vmem>>, vector<1x64x64xbf16>
    %8 = vector.shape_cast %7 : vector<1x64x64xbf16> to vector<64x64xbf16>
    %cst_6 = arith.constant dense<0.000000e+00> : vector<64x64xf32>
    %9 = tpu.matmul %6, %8, %cst_6 {dimension_numbers = #tpu.dot_dimension_numbers<[1], [0], [0], [1], [0, 0, 1, 1], [], []>} : vector<64x64xbf16>, vector<64x64xbf16>, vector<64x64xf32> -> vector<64x64xf32>
    %10 = arith.addf %3, %9 : vector<64x64xf32>
    %11 = vector.extract_strided_slice %0 {offsets = [2, 0], sizes = [62, 64], strides = [1, 1]} : vector<64x64xbf16> to vector<62x64xbf16>
    %12 = vector.extract_strided_slice %0 {offsets = [0, 0], sizes = [2, 64], strides = [1, 1]} : vector<64x64xbf16> to vector<2x64xbf16>
    %13 = tpu.concatenate %11, %12 in 0 : vector<62x64xbf16>, vector<2x64xbf16> -> vector<64x64xbf16>
    %c2 = arith.constant 2 : index
    %c0_7 = arith.constant 0 : index
    %c0_8 = arith.constant 0 : index
    %14 = vector.load %arg2[%c2, %c0_7, %c0_8] : memref<3x64x64xbf16, #tpu.memory_space<vmem>>, vector<1x64x64xbf16>
    %15 = vector.shape_cast %14 : vector<1x64x64xbf16> to vector<64x64xbf16>
    %cst_9 = arith.constant dense<0.000000e+00> : vector<64x64xf32>
    %16 = tpu.matmul %13, %15, %cst_9 {dimension_numbers = #tpu.dot_dimension_numbers<[1], [0], [0], [1], [0, 0, 1, 1], [], []>} : vector<64x64xbf16>, vector<64x64xbf16>, vector<64x64xf32> -> vector<64x64xf32>
    %17 = arith.addf %10, %16 : vector<64x64xf32>
    %c0_10 = arith.constant 0 : index
    %c0_11 = arith.constant 0 : index
    %18 = vector.load %arg3[%c0_10, %c0_11] : memref<1x64xf32, #tpu.memory_space<vmem>>, vector<1x64xf32>
    %19 = vector.broadcast %18 : vector<1x64xf32> to vector<64x64xf32>
    %20 = arith.addf %17, %19 : vector<64x64xf32>
    %cst_12 = arith.constant 0.000000e+00 : f32
    %21 = vector.broadcast %cst_12 : f32 to vector<64x64xf32>
    %22 = arith.maximumf %20, %21 : vector<64x64xf32>
    %c0_13 = arith.constant 0 : index
    %c0_14 = arith.constant 0 : index
    %23 = vector.load %arg9[%c0_13, %c0_14] : memref<64x64xf32, #tpu.memory_space<vmem>>, vector<64x64xf32>
    tpu.vector_store %arg9[%c0_13, %c0_14], %22 {strides = array<i32>} : memref<64x64xf32, #tpu.memory_space<vmem>>, vector<64x64xf32>,
    %c0_15 = arith.constant 0 : index
    %c0_16 = arith.constant 0 : index
    %24 = tpu.strided_load %arg9[%c0_15, %c0_16] {strides = array<i32: 2, 1>} : memref<64x64xf32, #tpu.memory_space<vmem>>, vector<32x64xf32>
    %c1_17 = arith.constant 1 : index
    %c0_18 = arith.constant 0 : index
    %25 = tpu.strided_load %arg9[%c1_17, %c0_18] {strides = array<i32: 2, 1>} : memref<64x64xf32, #tpu.memory_space<vmem>>, vector<32x64xf32>
    %26 = arith.maximumf %24, %25 : vector<32x64xf32>
    %27 = arith.truncf %26 : vector<32x64xf32> to vector<32x64xbf16>
    %c0_19 = arith.constant 0 : index
    %c0_20 = arith.constant 0 : index
    %c0_21 = arith.constant 0 : index
    %28 = vector.load %arg4[%c0_19, %c0_20, %c0_21] : memref<3x64x128xbf16, #tpu.memory_space<vmem>>, vector<1x64x128xbf16>
    %29 = vector.shape_cast %28 : vector<1x64x128xbf16> to vector<64x128xbf16>
    %cst_22 = arith.constant dense<0.000000e+00> : vector<32x128xf32>
    %30 = tpu.matmul %27, %29, %cst_22 {dimension_numbers = #tpu.dot_dimension_numbers<[1], [0], [0], [1], [0, 0, 1, 1], [], []>} : vector<32x64xbf16>, vector<64x128xbf16>, vector<32x128xf32> -> vector<32x128xf32>
    %31 = vector.extract_strided_slice %27 {offsets = [1, 0], sizes = [31, 64], strides = [1, 1]} : vector<32x64xbf16> to vector<31x64xbf16>
    %32 = vector.extract_strided_slice %27 {offsets = [0, 0], sizes = [1, 64], strides = [1, 1]} : vector<32x64xbf16> to vector<1x64xbf16>
    %33 = tpu.concatenate %31, %32 in 0 : vector<31x64xbf16>, vector<1x64xbf16> -> vector<32x64xbf16>
    %c1_23 = arith.constant 1 : index
    %c0_24 = arith.constant 0 : index
    %c0_25 = arith.constant 0 : index
    %34 = vector.load %arg4[%c1_23, %c0_24, %c0_25] : memref<3x64x128xbf16, #tpu.memory_space<vmem>>, vector<1x64x128xbf16>
    %35 = vector.shape_cast %34 : vector<1x64x128xbf16> to vector<64x128xbf16>
    %cst_26 = arith.constant dense<0.000000e+00> : vector<32x128xf32>
    %36 = tpu.matmul %33, %35, %cst_26 {dimension_numbers = #tpu.dot_dimension_numbers<[1], [0], [0], [1], [0, 0, 1, 1], [], []>} : vector<32x64xbf16>, vector<64x128xbf16>, vector<32x128xf32> -> vector<32x128xf32>
    %37 = arith.addf %30, %36 : vector<32x128xf32>
    %38 = vector.extract_strided_slice %27 {offsets = [2, 0], sizes = [30, 64], strides = [1, 1]} : vector<32x64xbf16> to vector<30x64xbf16>
    %39 = vector.extract_strided_slice %27 {offsets = [0, 0], sizes = [2, 64], strides = [1, 1]} : vector<32x64xbf16> to vector<2x64xbf16>
    %40 = tpu.concatenate %38, %39 in 0 : vector<30x64xbf16>, vector<2x64xbf16> -> vector<32x64xbf16>
    %c2_27 = arith.constant 2 : index
    %c0_28 = arith.constant 0 : index
    %c0_29 = arith.constant 0 : index
    %41 = vector.load %arg4[%c2_27, %c0_28, %c0_29] : memref<3x64x128xbf16, #tpu.memory_space<vmem>>, vector<1x64x128xbf16>
    %42 = vector.shape_cast %41 : vector<1x64x128xbf16> to vector<64x128xbf16>
    %cst_30 = arith.constant dense<0.000000e+00> : vector<32x128xf32>
    %43 = tpu.matmul %40, %42, %cst_30 {dimension_numbers = #tpu.dot_dimension_numbers<[1], [0], [0], [1], [0, 0, 1, 1], [], []>} : vector<32x64xbf16>, vector<64x128xbf16>, vector<32x128xf32> -> vector<32x128xf32>
    %44 = arith.addf %37, %43 : vector<32x128xf32>
    %c0_31 = arith.constant 0 : index
    %c0_32 = arith.constant 0 : index
    %45 = vector.load %arg5[%c0_31, %c0_32] : memref<1x128xf32, #tpu.memory_space<vmem>>, vector<1x128xf32>
    %46 = vector.broadcast %45 : vector<1x128xf32> to vector<32x128xf32>
    %47 = arith.addf %44, %46 : vector<32x128xf32>
    %cst_33 = arith.constant 0.000000e+00 : f32
    %48 = vector.broadcast %cst_33 : f32 to vector<32x128xf32>
    %49 = arith.maximumf %47, %48 : vector<32x128xf32>
    %50 = vector.shape_cast %49 : vector<32x128xf32> to vector<2x16x128xf32>
    %51 = tpu.iota {dimensions = array<i32: 1>} : vector<1x16x128xi32>
    %c6_i32 = arith.constant 6 : i32
    %52 = vector.broadcast %c6_i32 : i32 to vector<1x16x128xi32>
    %53 = arith.cmpi slt, %51, %52 : vector<1x16x128xi32>
    %cst_34 = arith.constant 0.000000e+00 : f32
    %54 = vector.shape_cast %53 : vector<1x16x128xi1> to vector<1x16x128xi1>
    %55 = vector.broadcast %54 : vector<1x16x128xi1> to vector<2x16x128xi1>
    %56 = vector.broadcast %cst_34 : f32 to vector<2x16x128xf32>
    %57 = arith.select %55, %50, %56 : vector<2x16x128xi1>, vector<2x16x128xf32>
    %cst_35 = arith.constant dense<0.000000e+00> : vector<2x128xf32>
    %58 = vector.multi_reduction <add>, %57, %cst_35 [1] : vector<2x16x128xf32> to vector<2x128xf32>
    %cst_36 = arith.constant 0.166666672 : f32
    %59 = vector.broadcast %cst_36 : f32 to vector<2x128xf32>
    %60 = arith.mulf %58, %59 : vector<2x128xf32>
    %61 = arith.truncf %60 : vector<2x128xf32> to vector<2x128xbf16>
    %c0_37 = arith.constant 0 : index
    %c0_38 = arith.constant 0 : index
    %62 = vector.load %arg6[%c0_37, %c0_38] : memref<128x128xbf16, #tpu.memory_space<vmem>>, vector<128x128xbf16>
    %cst_39 = arith.constant dense<0.000000e+00> : vector<2x128xf32>
    %63 = tpu.matmul %61, %62, %cst_39 {dimension_numbers = #tpu.dot_dimension_numbers<[1], [0], [0], [1], [0, 0, 1, 1], [], []>} : vector<2x128xbf16>, vector<128x128xbf16>, vector<2x128xf32> -> vector<2x128xf32>
    %c0_40 = arith.constant 0 : index
    %c0_41 = arith.constant 0 : index
    %64 = vector.load %arg7[%c0_40, %c0_41] : memref<1x128xf32, #tpu.memory_space<vmem>>, vector<1x128xf32>
    %65 = vector.broadcast %64 : vector<1x128xf32> to vector<2x128xf32>
    %66 = arith.addf %63, %65 : vector<2x128xf32>
    %cst_42 = arith.constant 0.000000e+00 : f32
    %67 = vector.broadcast %cst_42 : f32 to vector<2x128xf32>
    %68 = arith.maximumf %66, %67 : vector<2x128xf32>
    %c0_43 = arith.constant 0 : index
    %c0_44 = arith.constant 0 : index
    %c0_45 = arith.constant 0 : index
    %69 = vector.load %arg8[%c0_43, %c0_44, %c0_45] : memref<1x2x128xf32, #tpu.memory_space<vmem>>, vector<1x2x128xf32>
    %70 = vector.shape_cast %69 : vector<1x2x128xf32> to vector<2x128xf32>
    %71 = vector.shape_cast %68 : vector<2x128xf32> to vector<1x2x128xf32>
    tpu.vector_store %arg8[%c0_43, %c0_44, %c0_45], %71 {strides = array<i32>} : memref<1x2x128xf32, #tpu.memory_space<vmem>>, vector<1x2x128xf32>,
    return
  }
  func.func @transform_0(%arg0: i32) -> (i32, i32) {
    %c0_i32 = arith.constant 0 : i32
    %c0_i32_0 = arith.constant 0 : i32
    return %arg0, %c0_i32 : i32, i32
  }
  func.func @transform_1(%arg0: i32) -> (i32, i32, i32) {
    %c0_i32 = arith.constant 0 : i32
    %c0_i32_0 = arith.constant 0 : i32
    %c0_i32_1 = arith.constant 0 : i32
    %c0_i32_2 = arith.constant 0 : i32
    return %c0_i32, %c0_i32_0, %c0_i32_1 : i32, i32, i32
  }
  func.func @transform_2(%arg0: i32) -> (i32, i32) {
    %c0_i32 = arith.constant 0 : i32
    %c0_i32_0 = arith.constant 0 : i32
    %c0_i32_1 = arith.constant 0 : i32
    return %c0_i32, %c0_i32_0 : i32, i32
  }
  func.func @transform_3(%arg0: i32) -> (i32, i32, i32) {
    %c0_i32 = arith.constant 0 : i32
    %c0_i32_0 = arith.constant 0 : i32
    %c0_i32_1 = arith.constant 0 : i32
    %c0_i32_2 = arith.constant 0 : i32
    return %c0_i32, %c0_i32_0, %c0_i32_1 : i32, i32, i32
  }
  func.func @transform_4(%arg0: i32) -> (i32, i32) {
    %c0_i32 = arith.constant 0 : i32
    %c0_i32_0 = arith.constant 0 : i32
    %c0_i32_1 = arith.constant 0 : i32
    return %c0_i32, %c0_i32_0 : i32, i32
  }
  func.func @transform_5(%arg0: i32) -> (i32, i32) {
    %c0_i32 = arith.constant 0 : i32
    %c0_i32_0 = arith.constant 0 : i32
    %c0_i32_1 = arith.constant 0 : i32
    return %c0_i32, %c0_i32_0 : i32, i32
  }
  func.func @transform_6(%arg0: i32) -> (i32, i32) {
    %c0_i32 = arith.constant 0 : i32
    %c0_i32_0 = arith.constant 0 : i32
    %c0_i32_1 = arith.constant 0 : i32
    return %c0_i32, %c0_i32_0 : i32, i32
  }
  func.func @transform_7(%arg0: i32) -> (i32, i32, i32) {
    %c0_i32 = arith.constant 0 : i32
    %c0_i32_0 = arith.constant 0 : i32
    %c0_i32_1 = arith.constant 0 : i32
    return %arg0, %c0_i32, %c0_i32_0 : i32, i32, i32
  }
}

</mosaic_0001>

<bundles_post_ra>
// kernel: tpu_custom_call.1
= control target key start
LH: loop header
LB: loop body
LE: loop exit
PB: predicated region body
PF: predicated region fallthrough
CT: control target
= control target key end

     0   :  { %12 = vsyncpa [#allocation4], 0  ;;  %s1824_s0 = inlined_call_operand.vmem [shape: bf16[128,64], index: 0, kind: input, shape index: {}]   ;;  %s1825_s1 = inlined_call_operand.vmem [shape: bf16[3,64,64], index: 1, kind: input, shape index: {}]   ;;  %s1826_s2 = inlined_call_operand.vmem [shape: f32[1,64], index: 2, kind: input, shape index: {}]   ;;  %s1827_s3 = inlined_call_operand.hbm [shape: bf16[3,64,128], index: 3, kind: input, shape index: {}]   ;;  %s1828_s4 = inlined_call_operand.vmem [shape: f32[1,128], index: 4, kind: input, shape index: {}]   ;;  %s1829_s5 = inlined_call_operand.hbm [shape: bf16[128,128], index: 5, kind: input, shape index: {}]   ;;  %s1830_s6 = inlined_call_operand.vmem [shape: f32[1,128], index: 6, kind: input, shape index: {}]   ;;  %s1831_s7 = inlined_call_operand.hbm [shape: f32[2,2,128], index: 7, kind: output, shape index: {}]  }
   0x1   :  { %13 = vsyncpa [#allocation7], 0 }
   0x2   :  { %14 = vsyncpa [#allocation5], 0 }
   0x3   :  { %16 = vsyncpa [#allocation5 + $0x1], 0  ;;  %s1591_s24 = smov 0   ;;  %s1593_s25 = smov 0  }
   0x4   :  { %s1595_s26 = smov 0   ;;  %s1597_s27 = smov 0  }
   0x5 LB: > { %s1612_s28 = sadd.s32 4294967295, %s1545_s27   ;;  %s1118_s29 = sadd.s32 4294967294, %s1545_s27   ;;  %s1545_s27 = sphi %s1597_s27, %s1840_s27   ;;  %s1541_s26 = sphi %s1595_s26, %s1839_s26   ;;  %s1537_s25 = sphi %s1593_s25, %s1838_s25   ;;  %s1533_s24 = sphi %s1591_s24, %s1837_s24  }
   0x6   : > { %s1616_s30 = sadd.s32 1, %s1545_s27   ;;  %s181_s8 = sadd.s32 1, %s1541_s26 }
   0x7   : > { %s178_s9 = ssub.s32 %s1545_s27, %s1616_s30  ;;  %p191_p0 = scmp.ne.s32.totalorder %s1541_s26, %s1537_s25 }
   0x8   : > { %p179_p1 = scmp.eq.s32.totalorder %s178_s9, 0  ;;  %p192_p2 = scmp.eq.s32.totalorder %s1612_s28, 1 }
   0x9   : > { %p197_p3 = scmp.ne.s32.totalorder %s1537_s25, %s1533_s24  ;;  %p198_p4 = scmp.eq.s32.totalorder %s1118_s29, 1 }
   0xa   : > { %s1627_s10 = scalar_select %p179_p1, %s1541_s26, %s181_s8  }
   0xb   : > { %p1629_p5 = por %p192_p2, %p191_p0  ;;  %p1633_p6 = por %p198_p4, %p197_p3 }
   0xc   : > { %p1119_p7 = scmp.ge.s32.totalorder %s1545_s27, 1  ;;  %p205_p8 = scmp.lt.s32.totalorder %s1545_s27, 3 }
   0xd   : > { %p1371_p9 = scmp.eq.s32.totalorder %s1612_s28, 0  ;;  %s222_s16 = sshll.u32 %s1827_s3, 4  ;;  %s223_s16 = int_to_ptr.hbm [resolvable:$true] %s222_s16 }
   0xe   : > { %p1640_p10 = pnand %p1119_p7, %p205_p8  ;;  %s1547_s17 = smov [#allocation3]  }
   0xf   : > { %s224_s18 = sshll.u32 %s1547_s17, 4  ;;  %s239_s21 = sshll.u32 %s1829_s5, 4  ;;  %s225_s18 = int_to_ptr.vmem [resolvable:$true] %s224_s18  ;;  %s240_s21 = int_to_ptr.hbm [resolvable:$true] %s239_s21 }
  0x10   : > { %p1360_p11 = pneg %p1640_p10  ;;  %s1548_s22 = smov 64  }
  0x11   : > { %s1549_s23 = smov 4   ;;  %s1550_s29 = smov [#allocation6]  }
  0x12   : > { %p1361_p12 = pnand %p1371_p9, %p1360_p11  ;;  %s241_s8 = sshll.u32 %s1550_s29, 4  ;;  %s242_s8 = int_to_ptr.vmem [resolvable:$true] %s241_s8 }
  0x13   : > { %269 = sbr.rel (%p1640_p10) target bundleno = 618 (0x26a), region = 48 }
  0x14   : > { %1363 = dma.hbm_to_vmem [thread:$0]  (!%p1361_p12), %s223_s16, 1536, %s225_s18, [#allocation4], %s1548_s22, %s1548_s22, %s1549_s23  }
  0x15   : > { %1366 = dma.hbm_to_vmem [thread:$0]  (!%p1361_p12), %s240_s21, 1024, %s242_s8, [#allocation7], %s1548_s22, %s1548_s22, %s1549_s23  }
  0x18   : > { %1520 = dma.done.wait (%p1371_p9), [#allocation4], 1536  }
  0x19   : > { %1522 = vsyncadd (%p1371_p9), [#allocation4], 4294965760 }
  0x1a   : > { %1524 = dma.done.wait (%p1371_p9), [#allocation7], 1024  }
  0x1b   : > { %1526 = vsyncadd (%p1371_p9), [#allocation7], 4294966272  ;;  %s1127_s9 = sshll.u32 %s1612_s28, 3  ;;  %v1317_v0 = vld [vmem:[%s1825_s1 + $0x38] sm:$0xff]  ;;  %v1316_v2 = vld [vmem:[%s1825_s1 + $0x30] sm:$0xff]  ;;  %vm389_vm1 = vcmask 1047552  }
  0x1c   : > { %p308_p13 = scmp.lt.s32.totalorder %s1127_s9, 15  ;;  %v1313_v1 = vld [vmem:[%s1825_s1 + $0x18] sm:$0xff]  ;;  %1346 = vmatpush.bf16.msra.mxu2 %v1317_v0  ;;  %v1312_v3 = vld [vmem:[%s1825_s1 + $0x10] sm:$0xff]  ;;  %442 = vmatpush.bf16.msra.mxu0 %v1317_v0  ;;  %v1315_v11 = vld [vmem:[%s1825_s1 + $0x28] sm:$0xff]  ;;  %vm350_vm0 = vsmask.f32 7424 }
  0x1d   : > { %503 = vmatpush.bf16.msra.mxu1 %v1313_v1  ;;  %v1311_v12 = vld [vmem:[%s1825_s1 + $0x8] sm:$0xff]  ;;  %v1314_v19 = vld [vmem:[%s1825_s1 + $0x20] sm:$0xff]  ;;  %vm1705_vm2 = vmand %vm389_vm1, %vm350_vm0  ;;  %vm425_vm3 = vcmask 523264   ;;  %vm528_vm4 = vcmask 1046528   ;;  %vm954_vm6 = vcmask 1041409   ;;  %s304_s18 = sand.u32 1, %s1537_s25  }
  0x1e   : > { %s1842_s9 = smov (!%p308_p13, %s1127_s9), 15  ;;  %v1310_v20 = vld [vmem:[%s1825_s1] sm:$0xff]  ;;  %v1321_v24 = vld [vmem:[%s1825_s1 + $0x58] sm:$0xff]  ;;  %v1320_v28 = vld [vmem:[%s1825_s1 + $0x50] sm:$0xff]  ;;  %s1126_s19 = sshll.u32 %s304_s18, 1 }
  0x1f   : > { %s1128_s14 = sshll.u32 %s1842_s9, 2  ;;  %v1319_v30 = vld [vmem:[%s1825_s1 + $0x48] sm:$0xff]  ;;  %v1318_v32 = vld [vmem:[%s1825_s1 + $0x40] sm:$0xff]  ;;  %s1304_s20 = sshll.u32 %s1612_s28, 1 }
  0x20   : > { %s1668_s16 = scalar_lea.vmem %s1824_s0, %s1128_s14  ;;  %1347 = vmatpush.bf16.msra.mxu2 %v1316_v2  ;;  %443 = vmatpush.bf16.msra.mxu0 %v1316_v2  ;;  %v1753_v57 = vld [vmem:[%s1826_s2] ss:$0 sm:$0xff]  ;;  %s1032_s8 = scalar_lea.hbm %s1831_s7, %s1304_s20 }
  0x21   : > { %v1343_v4 = vld [vmem:[%s1668_s16] sm:$0xff]   ;;  %v1684_v6 = vld [vmem:[%s1668_s16 + $0x18] sm:$0xff]  ;;  %v1307_v8 = vld [vmem:[%s1668_s16 + $0x8] sm:$0xff]  ;;  %504 = vmatpush.bf16.msra.mxu1 %v1312_v3  ;;  %s306_s9 = scalar_lea.vmem [#allocation8], %s1126_s19  ;;  %s1022_s15 = scalar_lea.sflag [#allocation5], %s304_s18 }
  0x22   : > { %v1344_v5 = vunpack.c.l.b16 %v1343_v4  ;;  %v354_v7 = vshll.u32 %v1343_v4, 16  ;;  %v375_v9 = vshll.u32 %v1684_v6, 16  ;;  %v379_v13 = vshrl.u32 %v1684_v6, 16  ;;  %v1308_v31 = vld [vmem:[%s1668_s16 + $0x10] sm:$0xff]  ;;  %s1034_s14 = sshll.u32 %s306_s9, 4  ;;  %s1036_s16 = sshll.u32 %s1032_s8, 4  ;;  %s1035_s14 = int_to_ptr.vmem [resolvable:$true] %s1034_s14  ;;  %s1037_s16 = int_to_ptr.hbm [resolvable:$true] %s1036_s16 }
  0x23   : > { %v352_v14 = vshrl.u32 %v1343_v4, 16  ;;  %v359_v18 = vshll.u32 %v1307_v8, 16  ;;  %v363_v33 = vshrl.u32 %v1307_v8, 16  ;;  %v367_v34 = vshll.u32 %v1308_v31, 16  ;;  %s1489_s28 = sshra.s32 %s1037_s16, 4  ;;  %s1495_s20 = scalar_lea.hbm %s1831_s7, 4  ;;  %s1490_s28 = int_to_ptr.hbm [resolvable:$true] %s1489_s28 }
  0x24   : > { %v1688_v10 = vpack.c.b16 %v1344_v5, %v1344_v5  ;;  %v377_v15 = vrot.slane %v375_v9, 1  ;;  %v356_v17 = vrot.slane %v354_v7, 1  ;;  %1348 = vmatpush.bf16.msra.mxu2 %v1315_v11  ;;  %444 = vmatpush.bf16.msra.mxu0 %v1315_v11  ;;  %v529_v35 = vrot.slane %v1343_v4, 1  ;;  %s1491_s13 = scalar_lea.hbm %s1490_s28, 2  ;;  %p1496_p3 = scmp.lt.s32.totalorder %s1490_s28, %s1831_s7 }
  0x25   : > { %505 = vmatpush.bf16.msra.mxu1 %v1311_v12  ;;  %v361_v26 = vrot.slane %v359_v18, 1  ;;  %v530_v36 = vrot.slane %v1307_v8, 1  ;;  %v369_v38 = vrot.slane %v367_v34, 1  ;;  %v371_v41 = vshrl.u32 %v1308_v31, 16  ;;  %p1492_p0 = scmp.ne.s32.totalorder %s1490_s28, %s1491_s13  ;;  %p1497_p4 = scmp.lt.s32.totalorder %s1495_s20, %s1491_s13 }
  0x26   : > { %v385_v16 = vshll.u32 %v1688_v10, 16  ;;  %v381_v21 = vor.u32 %v379_v13, %v377_v15  ;;  %v357_v25 = vor.u32 %v356_v17, %v352_v14  ;;  %v532_v42 = vrot.slane %v1308_v31, 1 }
  0x27   : > { %v365_v37 = vor.u32 %v363_v33, %v361_v26  ;;  %v531_v39 = vsel %vm528_vm4, %v529_v35, %v530_v36  ;;  %v373_v43 = vor.u32 %v371_v41, %v369_v38  ;;  %v534_v46 = vrot.slane %v1684_v6, 1  ;;  %p1493_p1 = pnand %p1492_p0, %p1629_p5  ;;  %p1498_p7 = por %p1497_p4, %p1496_p3 }
  0x28   : > { %v387_v22 = vrot.slane %v385_v16, 1  ;;  %1349 = vmatpush.bf16.msra.mxu2 %v1314_v19  ;;  %445 = vmatpush.bf16.msra.mxu0 %v1314_v19  ;;  %v362_v29 = vsel %vm350_vm0, %v357_v25, %v361_v26  ;;  %v533_v44 = vsel %vm528_vm4, %v530_v36, %v532_v42  ;;  %v536_v48 = vrot.slane %v1688_v10, 1  ;;  %v1332_v26 = vld [vmem:[#allocation3 + $0x50] sm:$0xff]  ;;  %v1330_v36 = vld [vmem:[#allocation3 + $0x40] sm:$0xff] }
  0x29   : > { %506 = vmatpush.bf16.msra.mxu1 %v1310_v20  ;;  %v370_v40 = vsel %vm350_vm0, %v365_v37, %v369_v38  ;;  %v378_v45 = vsel %vm350_vm0, %v373_v43, %v377_v15  ;;  %v535_v47 = vsel %vm528_vm4, %v532_v42, %v534_v46  ;;  %v1333_v20 = vld [vmem:[#allocation3 + $0x58] sm:$0xff]  ;;  %v1326_v37 = vld [vmem:[#allocation3 + $0x20] sm:$0xff]  ;;  %p1494_p2 = pneg %p1493_p1 }
  0x2a   : > { %v391_v27 = vsel %vm1705_vm2, %v381_v21, %v387_v22  ;;  %v540_v49 = vsel %vm528_vm4, %v534_v46, %v536_v48  ;;  %v1329_v21 = vld [vmem:[#allocation3 + $0x38] sm:$0xff] }
  0x2b   : > { %1168 = vmatmul.msk.bf16.vlgmr.msra.gmra.mxu2 %vm425_vm3, %v391_v27  ;;  %1165 = vmatmul.msk.bf16.vlgmr.msra.gmra.mxu0 %vm425_vm3, %v362_v29  ;;  %v1328_v27 = vld [vmem:[#allocation3 + $0x30] sm:$0xff]  ;;  %v1325_v46 = vld [vmem:[#allocation3 + $0x18] sm:$0xff]  ;;  %p1499_p8 = pnand %p1498_p7, %p1494_p2 }
  0x2c   : > { %589 = vmatpush.bf16.msrb.mxu2 %v1321_v24  ;;  %1185 = vmatmul.msk.bf16.vlgmr.msra.gmra.mxu1 %vm425_vm3, %v1343_v4 }
  0x2d   : > { %868 = vmatpush.bf16.msrb.mxu0 %v1333_v20  ;;  %757 = vmatpush.bf16.msra.mxu3 %v1329_v21 }
  0x30   : > { %590 = vmatpush.bf16.msrb.mxu2 %v1320_v28 }
  0x31   : > { %869 = vmatpush.bf16.msrb.mxu0 %v1332_v26  ;;  %758 = vmatpush.bf16.msra.mxu3 %v1328_v27 }
  0x34   : > { %591 = vmatpush.bf16.msrb.mxu2 %v1319_v30 }
  0x38   : > { %592 = vmatpush.bf16.msrb.mxu2 %v1318_v32  ;;  %v1327_v32 = vld [vmem:[#allocation3 + $0x28] sm:$0xff] }
  0x39   : > { %759 = vmatpush.bf16.msra.mxu3 %v1327_v32 }
  0x3b   : > { %1213 = vmatmul.msk.bf16.vlgmr.msrb.gmra.mxu2 %vm425_vm3, %v531_v39  ;;  %1166 = vmatmul.msk.bf16.gmra.mxu0 %vm425_vm3, %v370_v40 }
  0x3c   : > { %1186 = vmatmul.msk.bf16.gmra.mxu1 %vm425_vm3, %v1307_v8 }
  0x3d   : > { %760 = vmatpush.bf16.msra.mxu3 %v1326_v37 }
  0x41   : > { %804 = vmatpush.bf16.msrb.mxu3 %v1325_v46 }
  0x4b   : > { %1214 = vmatmul.msk.bf16.gmra.mxu2 %vm425_vm3, %v533_v44  ;;  %1167 = vmatmul.msk.bf16.gmra.mxu0 %vm425_vm3, %v378_v45 }
  0x4c   : > { %1187 = vmatmul.msk.bf16.gmra.mxu1 %vm425_vm3, %v1308_v31  ;;  %v1331_v31 = vld [vmem:[#allocation3 + $0x48] sm:$0xff] }
  0x4d   : > { %870 = vmatpush.bf16.msrb.mxu0 %v1331_v31 }
  0x51   : > { %871 = vmatpush.bf16.msrb.mxu0 %v1330_v36  ;;  %v1339_v36 = vld [vmem:[#allocation6 + $0x28] sm:$0xff] }
  0x5b   : > { %1215 = vmatmul.msk.bf16.gmra.mxu2 %vm425_vm3, %v535_v47 }
  0x5c   : > { %1188 = vmatmul.msk.bf16.gmra.mxu1 %vm425_vm3, %v1684_v6 }
  0x6b   : > { %1216 = vmatmul.msk.bf16.gmra.mxu2 %vm425_vm3, %v540_v49 }
  0xa8   : > { %v447_v52 = vpop.f32.mrf.mxu0 }
  0xa9   : > { %v508_v50 = vpop.f32.mrf.mxu1 }
  0xaa   : > { %v509_v56 = vadd.f32 %v508_v50, %v447_v52  ;;  %v1324_v50 = vld [vmem:[#allocation3 + $0x10] sm:$0xff] }
  0xab   : > { %805 = vmatpush.bf16.msrb.mxu3 %v1324_v50  ;;  %v1336_v50 = vld [vmem:[#allocation6 + $0x10] sm:$0xff] }
  0xae   : > { %v1746_v51 = vpop.f32.mrf.mxu2 }
  0xb0   : > { %v449_v55 = vpop.f32.mrf.mxu0 }
  0xb1   : > { %v510_v53 = vpop.f32.mrf.mxu1 }
  0xb2   : > { %v511_v0 = vadd.f32 %v510_v53, %v449_v55 }
  0xb6   : > { %v1748_v54 = vpop.f32.mrf.mxu2 }
  0xb8   : > { %v452_v63 = vpop.f32.mrf.mxu0 }
  0xb9   : > { %v513_v60 = vpop.f32.mrf.mxu1 }
  0xba   : > { %v514_v5 = vadd.f32 %v513_v60, %v452_v63 }
  0xbe   : > { %v594_v58 = vpop.f32.mrf.mxu2 }
  0xbf   : > { %v614_v59 = vadd.f32 %v594_v58, %v509_v56 }
  0xc0   : > { %v454_v7 = vpop.f32.mrf.mxu0 }
  0xc1   : > { %v626_v61 = vadd.f32 %v1753_v57, %v614_v59  ;;  %v515_v4 = vpop.f32.mrf.mxu1 }
  0xc2   : > { %v516_v13 = vadd.f32 %v515_v4, %v454_v7  ;;  %v1323_v4 = vld [vmem:[#allocation3 + $0x8] sm:$0xff] }
  0xc3   : > { %v634_v62 = vmax.f32 %v626_v61, 0.0  ;;  %806 = vmatpush.bf16.msrb.mxu3 %v1323_v4 }
  0xc5   : > { %642 = vst.msk [vmem:[#allocation2] sm:$0xff] %vm425_vm3, %v634_v62 }
  0xc6   : > { %v596_v1 = vpop.f32.mrf.mxu2 }
  0xc7   : > { %v615_v2 = vadd.f32 %v596_v1, %v511_v0 }
  0xc8   : > { %v457_v16 = vpop.f32.mrf.mxu0 }
  0xc9   : > { %v627_v3 = vadd.f32 %v1753_v57, %v615_v2  ;;  %v518_v12 = vpop.f32.mrf.mxu1 }
  0xca   : > { %v519_v18 = vadd.f32 %v518_v12, %v457_v16 }
  0xcb   : > { %v635_v6 = vmax.f32 %v627_v3, 0.0 }
  0xcd   : > { %643 = vst.msk [vmem:[#allocation2 + $0x8] sm:$0xff] %vm425_vm3, %v635_v6 }
  0xce   : > { %v599_v8 = vpop.f32.mrf.mxu2 }
  0xcf   : > { %v616_v9 = vadd.f32 %v599_v8, %v514_v5  ;;  %v1322_v8 = vld [vmem:[#allocation3] sm:$0xff] }
  0xd0   : > { %v459_v29 = vpop.f32.mrf.mxu0  ;;  %807 = vmatpush.bf16.msrb.mxu3 %v1322_v8 }
  0xd1   : > { %v628_v10 = vadd.f32 %v1753_v57, %v616_v9  ;;  %v520_v22 = vpop.f32.mrf.mxu1 }
  0xd2   : > { %v521_v33 = vadd.f32 %v520_v22, %v459_v29 }
  0xd3   : > { %v636_v11 = vmax.f32 %v628_v10, 0.0 }
  0xd4   : > { %v650_v55 = vld [vmem:[#allocation2] ss:$2 sm:$0xff] }
  0xd5   : > { %644 = vst.msk [vmem:[#allocation2 + $0x10] sm:$0xff] %vm425_vm3, %v636_v11 }
  0xd6   : > { %v601_v14 = vpop.f32.mrf.mxu2 }
  0xd7   : > { %v617_v15 = vadd.f32 %v601_v14, %v516_v13 }
  0xd9   : > { %v629_v17 = vadd.f32 %v1753_v57, %v617_v15  ;;  %v523_v38 = vpop.f32.mrf.mxu1 }
  0xda   : > { %v524_v41 = vadd.f32 %v523_v38, %v1746_v51  ;;  %v658_v51 = vld [vmem:[#allocation2 + $0x1] ss:$2 sm:$0xff] }
  0xdb   : > { %v637_v19 = vmax.f32 %v629_v17, 0.0  ;;  %v665_v60 = vmax.f32 %v650_v55, %v658_v51 }
  0xdd   : > { %645 = vst.msk [vmem:[#allocation2 + $0x18] sm:$0xff] %vm425_vm3, %v637_v19  ;;  %v669_v63 = vpack.c.bf16 %v665_v60, %v665_v60 }
  0xde   : > { %v604_v24 = vpop.f32.mrf.mxu2 }
  0xdf   : > { %v618_v25 = vadd.f32 %v604_v24, %v519_v18  ;;  %v685_v3 = vunpack.c.l.b16 %v669_v63 }
  0xe1   : > { %v630_v28 = vadd.f32 %v1753_v57, %v618_v25  ;;  %v525_v45 = vpop.f32.mrf.mxu1  ;;  %v707_v25 = vpack.c.b16 %v685_v3, %v685_v3 }
  0xe2   : > { %v526_v52 = vadd.f32 %v525_v45, %v1748_v54  ;;  %v899_v45 = vlaneseq }
  0xe3   : > { %v638_v30 = vmax.f32 %v630_v28, 0.0  ;;  %v709_v27 = vshll.u32 %v707_v25, 16  ;;  %v822_v28 = vrot.slane %v707_v25, 1 }
  0xe4   : > { %v652_v48 = vld [vmem:[#allocation2 + $0x10] ss:$2 sm:$0xff]  ;;  %v660_v49 = vld [vmem:[#allocation2 + $0x11] ss:$2 sm:$0xff] }
  0xe5   : > { %646 = vst.msk [vmem:[#allocation2 + $0x20] sm:$0xff] %vm425_vm3, %v638_v30  ;;  %v666_v58 = vmax.f32 %v652_v48, %v660_v49  ;;  %v711_v31 = vrot.slane %v709_v27, 1  ;;  %v1413_v48 = vld [vmem:[%s1828_s4] ss:$0 sm:$0xff]  ;;  %v900_v49 = vshrl.u32 %v899_v45, 7 }
  0xe6   : > { %v606_v34 = vpop.f32.mrf.mxu2 }
  0xe7   : > { %v619_v35 = vadd.f32 %v606_v34, %v521_v33  ;;  %v670_v62 = vpack.c.bf16 %v666_v58, %v666_v58  ;;  %v1341_v33 = vld [vmem:[#allocation6 + $0x38] sm:$0xff]  ;;  %v1340_v34 = vld [vmem:[#allocation6 + $0x30] sm:$0xff]  ;;  %vm902_vm5 = vcmp.lt.s32.totalorder %v900_v49, 6  ;;  %v1334_v58 = vld [vmem:[#allocation6] sm:$0xff] }
  0xe8   : > { %1006 = vmatpush.bf16.msrb.mxu1 %v1341_v33 }
  0xe9   : > { %v631_v39 = vadd.f32 %v1753_v57, %v619_v35  ;;  %v686_v2 = vunpack.c.l.b16 %v670_v62 }
  0xeb   : > { %v639_v40 = vmax.f32 %v631_v39, 0.0  ;;  %v689_v5 = vpack.c.b16 %v686_v2, %v685_v3 }
  0xec   : > { %1007 = vmatpush.bf16.msrb.mxu1 %v1340_v34 }
  0xed   : > { %647 = vst.msk [vmem:[#allocation2 + $0x28] sm:$0xff] %vm425_vm3, %v639_v40  ;;  %v694_v11 = vshll.u32 %v689_v5, 16  ;;  %v819_v16 = vrot.slane %v689_v5, 1  ;;  %v692_v18 = vshrl.u32 %v689_v5, 16 }
  0xee   : > { %v609_v42 = vpop.f32.mrf.mxu2 }
  0xef   : > { %v620_v43 = vadd.f32 %v609_v42, %v524_v41  ;;  %v696_v15 = vrot.slane %v694_v11, 1  ;;  %v1338_v42 = vld [vmem:[#allocation6 + $0x20] sm:$0xff] }
  0xf0   : > { %1008 = vmatpush.bf16.msrb.mxu1 %v1339_v36 }
  0xf1   : > { %v632_v44 = vadd.f32 %v1753_v57, %v620_v43  ;;  %v697_v21 = vor.u32 %v696_v15, %v692_v18  ;;  %v1337_v43 = vld [vmem:[#allocation6 + $0x18] sm:$0xff] }
  0xf3   : > { %v640_v47 = vmax.f32 %v632_v44, 0.0 }
  0xf4   : > { %v654_v0 = vld [vmem:[#allocation2 + $0x20] ss:$2 sm:$0xff]  ;;  %v662_v1 = vld [vmem:[#allocation2 + $0x21] ss:$2 sm:$0xff]  ;;  %1009 = vmatpush.bf16.msrb.mxu1 %v1338_v42 }
  0xf5   : > { %648 = vst.msk [vmem:[#allocation2 + $0x30] sm:$0xff] %vm425_vm3, %v640_v47  ;;  %v667_v54 = vmax.f32 %v654_v0, %v662_v1 }
  0xf6   : > { %v611_v53 = vpop.f32.mrf.mxu2 }
  0xf7   : > { %v621_v56 = vadd.f32 %v611_v53, %v526_v52  ;;  %v671_v10 = vpack.c.bf16 %v667_v54, %v667_v54  ;;  %v1335_v53 = vld [vmem:[#allocation6 + $0x8] sm:$0xff] }
  0xf8   : > { %1010 = vmatpush.bf16.msrb.mxu1 %v1337_v43 }
  0xf9   : > { %v633_v59 = vadd.f32 %v1753_v57, %v621_v56  ;;  %v687_v12 = vunpack.c.l.b16 %v671_v10 }
  0xfb   : > { %v641_v61 = vmax.f32 %v633_v59, 0.0 }
  0xfc   : > { %1011 = vmatpush.bf16.msrb.mxu1 %v1336_v50 }
  0xfd   : > { %649 = vst.msk [vmem:[#allocation2 + $0x38] sm:$0xff] %vm425_vm3, %v641_v61 }
 0x100   : > { %1012 = vmatpush.bf16.msrb.mxu1 %v1335_v53 }
 0x104   : > { %v656_v6 = vld [vmem:[#allocation2 + $0x30] ss:$2 sm:$0xff]  ;;  %v664_v7 = vld [vmem:[#allocation2 + $0x31] ss:$2 sm:$0xff]  ;;  %1013 = vmatpush.bf16.msrb.mxu1 %v1334_v58 }
 0x105   : > { %v668_v9 = vmax.f32 %v656_v6, %v664_v7 }
 0x107   : > { %v672_v57 = vpack.c.bf16 %v668_v9, %v668_v9 }
 0x109   : > { %v688_v13 = vunpack.c.l.b16 %v672_v57 }
 0x10b   : > { %v690_v14 = vpack.c.b16 %v688_v13, %v687_v12 }
 0x10d   : > { %v820_v17 = vrot.slane %v690_v14, 1  ;;  %v699_v19 = vshll.u32 %v690_v14, 16  ;;  %v703_v26 = vshrl.u32 %v690_v14, 16 }
 0x10f   : > { %v821_v20 = vsel %vm528_vm4, %v819_v16, %v820_v17  ;;  %v701_v22 = vrot.slane %v699_v19, 1  ;;  %v825_v30 = vsel %vm528_vm4, %v820_v17, %v822_v28 }
 0x110   : > { %1269 = vmatmul.msk.bf16.vlgmr.msrb.gmra.mxu0 %vm425_vm3, %v821_v20 }
 0x111   : > { %v702_v24 = vsel %vm350_vm0, %v697_v21, %v701_v22  ;;  %v705_v29 = vor.u32 %v703_v26, %v701_v22  ;;  %v1414_v21 = vld [vmem:[%s1830_s6] ss:$0 sm:$0xff] }
 0x112   : > { %1233 = vmatmul.msk.bf16.vlgmr.msra.gmra.mxu3 %vm425_vm3, %v702_v24 }
 0x113   : > { %v713_v32 = vsel %vm1705_vm2, %v705_v29, %v711_v31 }
 0x120   : > { %1270 = vmatmul.msk.bf16.gmra.mxu0 %vm425_vm3, %v825_v30 }
 0x122   : > { %1234 = vmatmul.msk.bf16.gmra.mxu3 %vm425_vm3, %v713_v32 }
 0x132   : > { %1251 = vmatmul.msk.bf16.vlgmr.msrb.gmra.mxu3 %vm425_vm3, %v689_v5 }
 0x142   : > { %1252 = vmatmul.msk.bf16.gmra.mxu3 %vm425_vm3, %v690_v14 }
 0x18d   : > { %v873_v35 = vpop.f32.mrf.mxu0 }
 0x195   : > { %v762_v37 = vpop.f32.mrf.mxu3  ;;  %v875_v38 = vpop.f32.mrf.mxu0 }
 0x19d   : > { %v764_v39 = vpop.f32.mrf.mxu3  ;;  %v878_v40 = vpop.f32.mrf.mxu0 }
 0x1a5   : > { %v767_v41 = vpop.f32.mrf.mxu3  ;;  %v880_v23 = vpop.f32.mrf.mxu0 }
 0x1ad   : > { %v769_v44 = vpop.f32.mrf.mxu3 }
 0x1b5   : > { %v809_v46 = vpop.f32.mrf.mxu3 }
 0x1b6   : > { %v810_v47 = vadd.f32 %v809_v46, %v762_v37 }
 0x1b8   : > { %v883_v52 = vadd.f32 %v873_v35, %v810_v47 }
 0x1ba   : > { %v891_v55 = vadd.f32 %v1413_v48, %v883_v52 }
 0x1bc   : > { %v895_v51 = vmax.f32 %v891_v55, 0.0 }
 0x1bd   : > { %v811_v56 = vpop.f32.mrf.mxu3 }
 0x1be   : > { %v908_v59 = vsel %vm902_vm5, %v895_v51, 0.0 }
 0x1bf   : > { %v913_v60 = vrot.slane %v908_v59, 4 }
 0x1c1   : > { %v914_v61 = vadd.f32 %v913_v60, %v908_v59 }
 0x1c3   : > { %v915_v0 = vrot.slane %v914_v61, 2 }
 0x1c5   : > { %v814_v62 = vpop.f32.mrf.mxu3  ;;  %v916_v54 = vadd.f32 %v915_v0, %v914_v61 }
 0x1c6   : > { %v815_v63 = vadd.f32 %v814_v62, %v767_v41 }
 0x1c7   : > { %v917_v6 = vrot.slane %v916_v54, 1 }
 0x1c8   : > { %v885_v1 = vadd.f32 %v878_v40, %v815_v63 }
 0x1c9   : > { %v918_v10 = vadd.f32 %v917_v6, %v916_v54 }
 0x1ca   : > { %v893_v2 = vadd.f32 %v1413_v48, %v885_v1 }
 0x1cb   : > { %v926_v12 = vmul.f32 0.16666667, %v918_v10 }
 0x1cc   : > { %v897_v3 = vmax.f32 %v893_v2, 0.0 }
 0x1cd   : > { %v816_v4 = vpop.f32.mrf.mxu3  ;;  %v928_v15 = vpack.c.bf16 %v926_v12, %v926_v12 }
 0x1ce   : > { %v910_v5 = vsel %vm902_vm5, %v897_v3, 0.0 }
 0x1cf   : > { %v920_v7 = vrot.slane %v910_v5, 4  ;;  %v952_v17 = vunpack.c.l.b16 %v928_v15 }
 0x1d1   : > { %v921_v8 = vadd.f32 %v920_v7, %v910_v5 }
 0x1d3   : > { %v922_v9 = vrot.slane %v921_v8, 2 }
 0x1d5   : > { %v923_v57 = vadd.f32 %v922_v9, %v921_v8 }
 0x1d7   : > { %v924_v11 = vrot.slane %v923_v57, 1 }
 0x1d9   : > { %v925_v13 = vadd.f32 %v924_v11, %v923_v57 }
 0x1db   : > { %v927_v14 = vmul.f32 0.16666667, %v925_v13 }
 0x1dd   : > { %v929_v16 = vpack.c.bf16 %v927_v14, %v927_v14 }
 0x1df   : > { %v953_v18 = vunpack.c.l.b16 %v929_v16 }
 0x1e1   : > { %v955_v19 = vsel %vm954_vm6, %v953_v18, %v952_v17 }
 0x1e2   : > { %v956_v20 = vpack.c.b16 %v955_v19, %v955_v19 }
 0x1e4   : > { %1014 = vmatmul.bf16.vlgmr.msrb.gmra.mxu1 %v956_v20 }
 0x261   : > { %v1015_v22 = vpop.f32.mrf.mxu1 }
 0x262   : > { %v1016_v24 = vadd.f32 %v1414_v21, %v1015_v22 }
 0x264   : > { %v1019_v25 = vmax.f32 %v1016_v24, 0.0 }
 0x266   : > { %1020 = vst [vmem:[%s306_s9] sm:$0x3] %v1019_v25 }
 0x267   : > { %1502 = shalt.err (!%p1499_p8)
}
 0x268   : > { %1358 = dma.vmem_to_hbm [thread:$0]  (%p1629_p5), %s1035_s14, 32, %s1037_s16, %s1022_s15  }
 0x269   : > { %v1017_v26 = vpop.f32.mrf.mxu1 }
 0x26a PF: > { %p1375_p9 = scmp.ge.s32.totalorder %s1545_s27, 2  ;;  %s1048_s18 = sand.u32 1, %s1533_s24  }
 0x26b   : > { %s1049_s23 = scalar_lea.sflag [#allocation5], %s1048_s18 }
 0x26c   : > { %p1368_p10 = pnand %p1375_p9, %p1633_p6 }
 0x26e   : > { %p1369_p11 = pneg %p1368_p10 }
 0x270   : > { %1528 = dma.done.wait (%p1369_p11), %s1049_s23, 32  }
 0x271   : > { %1530 = vsyncadd (%p1369_p11), %s1049_s23, 4294967264  ;;  %p19_p12 = scmp.ge.s32.totalorder %s1616_s30, 4   ;;  %s1837_s24 = smov %s1537_s25 }
 0x272   : > { %s1838_s25 = smov %s1541_s26  ;;  %s1839_s26 = smov %s1627_s10 }
 0x273   : > { %s1840_s27 = smov %s1616_s30  ;;  %21 = sbr.rel (!%p19_p12) target bundleno = 5 (0x5), region = 103 }
 0x278   :  { %1055 = vsyncpa [#allocation4], 1 }
 0x279   :  { %1057 = vsyncpa [#allocation4 + $0x1], 1 }
 0x27a   :  { %1058 = vsyncpa [#allocation7], 1 }
 0x27b   :  { %1059 = vsyncpa [#allocation5], 1 }
 0x27c   :  { %1061 = vsyncpa [#allocation5 + $0x1], 1 }

</bundles_post_ra>
